<compile_context>
chip_gen: v7x
topology: tpu7x:2x2x1
jax: 0.10.0
libtpu: 0.0.40
codegen_flags: <defaults>
</compile_context>

<pallas_src>
import jax
import jax.numpy as jnp
from jax import lax
from jax.experimental import pallas as pl
from jax.experimental.pallas import tpu as pltpu


def _rope_kernel(theta_ref, e_sin_ref, e_cos_ref, x_ref, o_ref):
    # theta_ref : (1, C)  f32, C = D // 2 distinct thetas
    # e_sin_ref : (C, L)  wide dtype, e_sin[k, h*D+2k] = -1, e_sin[k, h*D+2k+1] = +1
    # e_cos_ref : (C, L)  wide dtype, e_cos[k, h*D+2k] = e_cos[k, h*D+2k+1] = +1
    # x_ref/o_ref: (block_n, L) in the I/O dtype, L = H * D
    block_n, L = x_ref.shape
    wide = e_sin_ref.dtype

    # Absolute sequence positions for this tile: (block_n, 1), constant along lanes.
    base = pl.program_id(0) * block_n
    pos = (base + lax.broadcasted_iota(jnp.int32, (block_n, 1), 0)).astype(jnp.float32)

    # Narrow-width trig: one phase per distinct theta (C lanes, not H*D lanes).
    phases = pos * theta_ref[...]                       # (block_n, C)
    sin_c = jnp.sin(phases).astype(wide)
    cos_c = jnp.cos(phases).astype(wide)

    # Expand C -> H*D lanes on the (otherwise idle) MXU.  The even-lane sign of
    # the sin term is baked into e_sin, so no negate / extra work is needed.
    # HIGHEST precision keeps the f32 path exact (matrix entries are 0/+-1).
    prec = lax.Precision.HIGHEST if wide == jnp.float32 else None
    sin_full = jnp.dot(sin_c, e_sin_ref[...], precision=prec,
                       preferred_element_type=wide)     # (block_n, L)
    cos_full = jnp.dot(cos_c, e_cos_ref[...], precision=prec,
                       preferred_element_type=wide)

    x = x_ref[...].astype(wide)

    # Pairwise partner x[2k] <-> x[2k+1]: two lane rotations (XLU) + a parity
    # select against a single-row mask.  Pairs are lane-adjacent within each
    # head (D even), so the wrap-around lanes are never selected.
    left = pltpu.roll(x, shift=L - 1, axis=1)           # left[i]  = x[(i + 1) % L]
    right = pltpu.roll(x, shift=1, axis=1)              # right[i] = x[(i - 1) % L]
    lane = lax.broadcasted_iota(jnp.int32, (1, L), 1)
    partner = jnp.where((lane & 1) == 0, left, right)

    o_ref[...] = (x * cos_full + partner * sin_full).astype(o_ref.dtype)


def _choose_block_n(N, L, C, io_dtype, wide_dtype):
    """Pick a sequence tile from a corrected VMEM budget.

    Accounts for the double-buffered I/O blocks, ~6 wide-dtype full-width
    temporaries (sin/cos tiles, rolls, partner, result) and the resident
    expansion matrices.  Aligns to the dtype's sublane packing and prefers an
    even number of grid steps so v7x's two TensorCores split evenly.
    """
    io = jnp.dtype(io_dtype).itemsize
    wi = jnp.dtype(wide_dtype).itemsize
    align = max(8, 32 // io)                       # 8 f32, 16 bf16, 32 int8/fp8
    resident = 2 * C * L * wi + 4 * C              # e_sin + e_cos + thetas
    budget = 12 * 1024 * 1024 - resident           # fits v5e's 16 MiB scoped VMEM
    per_row = 4 * L * io + 6 * L * wi              # 2x dbl-buffered in+out + temps
    max_rows = max(align, budget // per_row)
    if N <= max_rows:
        return N
    block = min(int(max_rows), 1024)
    block = max(align, (block // align) * align)
    steps = -(-N // block)
    if steps > 1 and steps % 2 == 1:               # prefer an even grid (2 TCs)
        block = -(-N // (steps + 1))
        block = max(align, -(-block // align) * align)
    return block


def rotary_encoding(x, base=1e-5, thetas=None, block_n=None):
    """Pallas implementation of RotaryEncoding.forward.

    x: (sequence_length, n_heads, d_embedding) with d_embedding even.
    Returns the same shape and dtype.
    """
    N, H, D = x.shape
    assert D % 2 == 0, "the last dimension must be even"
    C = D // 2
    L = H * D

    # Wide (compute) dtype for the full-width elementwise math.
    wide_dtype = jnp.bfloat16 if x.dtype == jnp.bfloat16 else jnp.float32

    if thetas is None:
        # torch.logspace(0, 1, C, base) == base ** linspace(0, 1, C)
        thetas = jnp.power(jnp.float32(base),
                           jnp.linspace(0.0, 1.0, C, dtype=jnp.float32))
    thetas = jnp.asarray(thetas, jnp.float32).reshape(1, C)

    # Tiny constant expansion matrices (C -> H*D lanes); the rotation sign is
    # baked into e_sin so the kernel does no negation.
    lane = jnp.arange(L)
    k_of_lane = (lane % D) // 2
    onehot = (jnp.arange(C)[:, None] == k_of_lane[None, :]).astype(wide_dtype)
    sign = jnp.where((lane % 2) == 0, -1.0, 1.0).astype(wide_dtype)
    e_cos = onehot
    e_sin = onehot * sign[None, :]

    # Free, contiguous view: lane-dense last dim of size H*D.
    x_flat = x.reshape(N, L)

    if block_n is None:
        block_n = _choose_block_n(N, L, C, x.dtype, wide_dtype)
    block_n = int(min(block_n, N))
    if block_n < N:
        block_n = max(8, (block_n // 8) * 8)       # keep sublane-aligned tiles
    grid = (pl.cdiv(N, block_n),)

    out_flat = pl.pallas_call(
        _rope_kernel,
        grid=grid,
        in_specs=[
            pl.BlockSpec((1, C), lambda i: (0, 0)),          # thetas (resident)
            pl.BlockSpec((C, L), lambda i: (0, 0)),          # e_sin (resident)
            pl.BlockSpec((C, L), lambda i: (0, 0)),          # e_cos (resident)
            pl.BlockSpec((block_n, L), lambda i: (i, 0)),    # x tile
        ],
        out_specs=pl.BlockSpec((block_n, L), lambda i: (i, 0)),
        out_shape=jax.ShapeDtypeStruct((N, L), x.dtype),
        compiler_params=pltpu.CompilerParams(
            dimension_semantics=("parallel",),
            vmem_limit_bytes=32 * 1024 * 1024),
    )(thetas, e_sin, e_cos, x_flat)

    return out_flat.reshape(N, H, D)


def rotary_reference(x, base=1e-5):
    """Pure-JAX reference mirroring the PyTorch module exactly."""
    N, H, D = x.shape
    C = D // 2
    thetas = jnp.power(jnp.float32(base), jnp.linspace(0.0, 1.0, C, dtype=jnp.float32))
    phases = jnp.arange(N, dtype=jnp.float32)[:, None] * thetas[None, :]   # (N, C)
    sin = jnp.sin(phases)[:, None, :]   # (N, 1, C)
    cos = jnp.cos(phases)[:, None, :]
    x1 = x.reshape(N, H, C, 2).astype(jnp.float32)
    xe, xo = x1[..., 0], x1[..., 1]
    oe = xe * cos - xo * sin
    oo = xo * cos + xe * sin
    return jnp.stack([oe, oo], axis=-1).reshape(N, H, D).astype(x.dtype)


if __name__ == "__main__":
    key = jax.random.PRNGKey(0)

    # (sequence_length, n_heads, d_embedding) layout as in the module.
    N, H, D = 8, 4, 32
    x = jax.random.normal(key, (N, H, D), dtype=jnp.float32)
    out = jax.block_until_ready(rotary_encoding(x))
    ref = rotary_reference(x)
    assert out.shape == x.shape and out.dtype == x.dtype
    assert jnp.allclose(out, ref, atol=1e-4, rtol=1e-4), "mismatch vs reference (small)"

    # Multi-step grid with a ragged last block to exercise the pipelined path.
    N2, H2, D2 = 300, 8, 64
    x2 = jax.random.normal(jax.random.PRNGKey(1), (N2, H2, D2), dtype=jnp.float32)
    out2 = jax.block_until_ready(rotary_encoding(x2, block_n=128))
    ref2 = rotary_reference(x2)
    # Slightly looser tolerance: large-angle sin/cos argument reduction may
    # differ by a few 1e-5 between the XLA and Mosaic implementations.
    assert jnp.allclose(out2, ref2, atol=1e-3, rtol=1e-3), "mismatch vs reference (tiled)"

    # TODO(synk): gamma-decayed (zeta**i) variant and find_best_gamma are not
    # exercised by forward() with the default init (gamma=None), so they are
    # not implemented.
    print("KERNEL_OK")
</pallas_src>

<mosaic_0001>
module attributes {stable_mosaic.version = 11 : i64} {
  func.func @_rope_kernel(%arg0: i32, %arg1: memref<1x16xf32, #tpu.memory_space<vmem>>, %arg2: memref<16x128xf32, #tpu.memory_space<vmem>>, %arg3: memref<16x128xf32, #tpu.memory_space<vmem>>, %arg4: memref<8x128xf32, #tpu.memory_space<vmem>>, %arg5: memref<8x128xf32, #tpu.memory_space<vmem>>) attributes {dimension_semantics = [#tpu.dimension_semantics<parallel>], iteration_bounds = array<i64: 1>, scalar_prefetch = 0 : i64, scratch_operands = 0 : i64, tpu.core_type = #tpu.core_type<tc>, window_params = [{pipeline_mode = #tpu.pipeline_mode<synchronous>, transform_indices = @transform_0, window_bounds = array<i64: 1, 16>}, {pipeline_mode = #tpu.pipeline_mode<synchronous>, transform_indices = @transform_1, window_bounds = array<i64: 16, 128>}, {pipeline_mode = #tpu.pipeline_mode<synchronous>, transform_indices = @transform_2, window_bounds = array<i64: 16, 128>}, {transform_indices = @transform_3, window_bounds = array<i64: 8, 128>}, {transform_indices = @transform_4, window_bounds = array<i64: 8, 128>}]} {
    %c8_i32 = arith.constant 8 : i32
    %0 = arith.muli %arg0, %c8_i32 : i32
    %1 = tpu.iota {dimensions = array<i32: 0>} : vector<8x1xi32>
    %2 = vector.broadcast %0 : i32 to vector<8x1xi32>
    %3 = arith.addi %2, %1 : vector<8x1xi32>
    %4 = arith.sitofp %3 : vector<8x1xi32> to vector<8x1xf32>
    %c0 = arith.constant 0 : index
    %c0_0 = arith.constant 0 : index
    %5 = vector.load %arg1[%c0, %c0_0] : memref<1x16xf32, #tpu.memory_space<vmem>>, vector<1x16xf32>
    %6 = vector.broadcast %4 : vector<8x1xf32> to vector<8x16xf32>
    %7 = vector.broadcast %5 : vector<1x16xf32> to vector<8x16xf32>
    %8 = arith.mulf %6, %7 : vector<8x16xf32>
    %9 = math.sin %8 : vector<8x16xf32>
    %10 = math.cos %8 : vector<8x16xf32>
    %c0_1 = arith.constant 0 : index
    %c0_2 = arith.constant 0 : index
    %11 = vector.load %arg2[%c0_1, %c0_2] : memref<16x128xf32, #tpu.memory_space<vmem>>, vector<16x128xf32>
    %cst = arith.constant dense<0.000000e+00> : vector<8x128xf32>
    %12 = tpu.matmul %9, %11, %cst {dimension_numbers = #tpu.dot_dimension_numbers<[1], [0], [0], [1], [0, 0, 1, 1], [], []>, precision = #tpu.contract_precision<fp32>} : vector<8x16xf32>, vector<16x128xf32>, vector<8x128xf32> -> vector<8x128xf32>
    %c0_3 = arith.constant 0 : index
    %c0_4 = arith.constant 0 : index
    %13 = vector.load %arg3[%c0_3, %c0_4] : memref<16x128xf32, #tpu.memory_space<vmem>>, vector<16x128xf32>
    %cst_5 = arith.constant dense<0.000000e+00> : vector<8x128xf32>
    %14 = tpu.matmul %10, %13, %cst_5 {dimension_numbers = #tpu.dot_dimension_numbers<[1], [0], [0], [1], [0, 0, 1, 1], [], []>, precision = #tpu.contract_precision<fp32>} : vector<8x16xf32>, vector<16x128xf32>, vector<8x128xf32> -> vector<8x128xf32>
    %c0_6 = arith.constant 0 : index
    %c0_7 = arith.constant 0 : index
    %15 = vector.load %arg4[%c0_6, %c0_7] : memref<8x128xf32, #tpu.memory_space<vmem>>, vector<8x128xf32>
    %c127_i32 = arith.constant 127 : i32
    %16 = tpu.dynamic_rotate %15 by %c127_i32 dim 1 : vector<8x128xf32>, i32 -> vector<8x128xf32>
    %c1_i32 = arith.constant 1 : i32
    %17 = tpu.dynamic_rotate %15 by %c1_i32 dim 1 : vector<8x128xf32>, i32 -> vector<8x128xf32>
    %18 = tpu.iota {dimensions = array<i32: 1>} : vector<1x128xi32>
    %c1_i32_8 = arith.constant 1 : i32
    %19 = vector.broadcast %c1_i32_8 : i32 to vector<1x128xi32>
    %20 = arith.andi %18, %19 : vector<1x128xi32>
    %c0_i32 = arith.constant 0 : i32
    %21 = vector.broadcast %c0_i32 : i32 to vector<1x128xi32>
    %22 = arith.cmpi eq, %20, %21 : vector<1x128xi32>
    %23 = vector.shape_cast %22 : vector<1x128xi1> to vector<1x128xi1>
    %24 = vector.broadcast %23 : vector<1x128xi1> to vector<8x128xi1>
    %25 = arith.select %24, %16, %17 : vector<8x128xi1>, vector<8x128xf32>
    %26 = arith.mulf %15, %14 : vector<8x128xf32>
    %27 = arith.mulf %25, %12 : vector<8x128xf32>
    %28 = arith.addf %26, %27 : vector<8x128xf32>
    %c0_9 = arith.constant 0 : index
    %c0_10 = arith.constant 0 : index
    %29 = vector.load %arg5[%c0_9, %c0_10] : memref<8x128xf32, #tpu.memory_space<vmem>>, vector<8x128xf32>
    tpu.vector_store %arg5[%c0_9, %c0_10], %28 {strides = array<i32>} : memref<8x128xf32, #tpu.memory_space<vmem>>, vector<8x128xf32>,
    return
  }
  func.func @transform_0(%arg0: i32) -> (i32, i32) {
    %c0_i32 = arith.constant 0 : i32
    %c0_i32_0 = arith.constant 0 : i32
    %c0_i32_1 = arith.constant 0 : i32
    return %c0_i32, %c0_i32_0 : i32, i32
  }
  func.func @transform_1(%arg0: i32) -> (i32, i32) {
    %c0_i32 = arith.constant 0 : i32
    %c0_i32_0 = arith.constant 0 : i32
    %c0_i32_1 = arith.constant 0 : i32
    return %c0_i32, %c0_i32_0 : i32, i32
  }
  func.func @transform_2(%arg0: i32) -> (i32, i32) {
    %c0_i32 = arith.constant 0 : i32
    %c0_i32_0 = arith.constant 0 : i32
    %c0_i32_1 = arith.constant 0 : i32
    return %c0_i32, %c0_i32_0 : i32, i32
  }
  func.func @transform_3(%arg0: i32) -> (i32, i32) {
    %c0_i32 = arith.constant 0 : i32
    %c0_i32_0 = arith.constant 0 : i32
    return %arg0, %c0_i32 : i32, i32
  }
  func.func @transform_4(%arg0: i32) -> (i32, i32) {
    %c0_i32 = arith.constant 0 : i32
    %c0_i32_0 = arith.constant 0 : i32
    return %arg0, %c0_i32 : i32, i32
  }
}

</mosaic_0001>

<bundles_post_ra>
// kernel: tpu_custom_call.1
= control target key start
LH: loop header
LB: loop body
LE: loop exit
PB: predicated region body
PF: predicated region fallthrough
CT: control target
= control target key end

     0   :  { %9 = vsyncpa [#allocation3], 0  ;;  %s1754_s0 = inlined_call_operand.hbm [shape: f32[1,16], index: 0, kind: input, shape index: {}]   ;;  %s1755_s1 = inlined_call_operand.hbm [shape: f32[16,128], index: 1, kind: input, shape index: {}]   ;;  %s1756_s2 = inlined_call_operand.hbm [shape: f32[16,128], index: 2, kind: input, shape index: {}]   ;;  %s1757_s3 = inlined_call_operand.vmem [shape: f32[8,128], index: 3, kind: input, shape index: {}]   ;;  %s1758_s4 = inlined_call_operand.hbm [shape: f32[8,128], index: 4, kind: output, shape index: {}]  }
   0x1   :  { %10 = vsyncpa [#allocation6], 0 }
   0x2   :  { %11 = vsyncpa [#allocation4], 0  ;;  %s1543_s15 = smov [#allocation5]   ;;  %s1449_s19 = scalar_lea.hbm %s1755_s1, 256 }
   0x3   :  { %s27_s16 = sshll.u32 %s1543_s15, 4  ;;  %p1450_p0 = scmp.ne.s32.totalorder %s1755_s1, %s1449_s19  ;;  %s28_s16 = int_to_ptr.vmem [resolvable:$true] %s27_s16 }
   0x4   :  { %p1453_p1 = scmp.lt.u32.totalorder %s1449_s19, %s1755_s1 }
   0x6   :  { %p1455_p2 = pnand %p1453_p1, %p1450_p0 }
   0x8   :  { %1458 = shalt.err (!%p1455_p2)
}
   0x9   :  { %s1459_s24 = scalar_lea.vmem %s28_s16, 256  ;;  %p1464_p4 = scmp.lt.s32.totalorder %s28_s16, %s28_s16 }
   0xa   :  { %p1460_p3 = scmp.ne.s32.totalorder %s28_s16, %s1459_s24  ;;  %p1465_p5 = scmp.lt.s32.totalorder %s1459_s24, %s1459_s24 }
   0xc   :  { %p1466_p6 = por %p1465_p5, %p1464_p4 }
   0xe   :  { %p1467_p7 = pnand %p1466_p6, %p1460_p3 }
  0x10   :  { %1470 = shalt.err (!%p1467_p7)
}
  0x11   :  { %s1544_s25 = smov 128   ;;  %s1545_s26 = smov 8  }
  0x12   :  { %33 = dma.hbm_to_vmem [thread:$0]  %s1755_s1, 256, %s28_s16, [#allocation6], %s1544_s25, %s1544_s25, %s1545_s26  }
  0x13   :  { %s1546_s29 = smov [#allocation2]   ;;  %s1547_s5 = smov [#allocation7]  }
  0x14   :  { %s18_s30 = sshll.u32 %s1546_s29, 4  ;;  %s39_s6 = sshll.u32 %s1547_s5, 4  ;;  %s19_s30 = int_to_ptr.vmem [resolvable:$true] %s18_s30  ;;  %s40_s6 = int_to_ptr.vmem [resolvable:$true] %s39_s6 }
  0x15   :  { %s1471_s9 = scalar_lea.hbm %s1754_s0, 16 }
  0x16   :  { %p1472_p8 = scmp.ne.s32.totalorder %s1754_s0, %s1471_s9  ;;  %p1475_p9 = scmp.lt.u32.totalorder %s1471_s9, %s1754_s0 }
  0x18   :  { %p1477_p10 = pnand %p1475_p9, %p1472_p8 }
  0x1a   :  { %1480 = shalt.err (!%p1477_p10)
}
  0x1b   :  { %s1481_s1 = scalar_lea.vmem %s19_s30, 16  ;;  %s1485_s14 = scalar_lea.vmem %s19_s30, 32 }
  0x1c   :  { %p1482_p11 = scmp.ne.s32.totalorder %s19_s30, %s1481_s1  ;;  %p1486_p12 = scmp.lt.s32.totalorder %s19_s30, %s19_s30 }
  0x1d   :  { %p1487_p13 = scmp.lt.s32.totalorder %s1485_s14, %s1481_s1 }
  0x1f   :  { %p1488_p0 = por %p1487_p13, %p1486_p12 }
  0x21   :  { %p1489_p1 = pnand %p1488_p0, %p1482_p11 }
  0x23   :  { %1492 = shalt.err (!%p1489_p1)
}
  0x24   :  { %21 = dma.hbm_to_vmem [thread:$0]  %s1754_s0, 16, %s19_s30, [#allocation3]  }
  0x25   :  { %s1493_s19 = scalar_lea.hbm %s1756_s2, 256 }
  0x26   :  { %p1494_p2 = scmp.ne.s32.totalorder %s1756_s2, %s1493_s19  ;;  %p1497_p3 = scmp.lt.u32.totalorder %s1493_s19, %s1756_s2 }
  0x28   :  { %p1499_p4 = pnand %p1497_p3, %p1494_p2 }
  0x2a   :  { %1502 = shalt.err (!%p1499_p4)
}
  0x2b   :  { %s1503_s24 = scalar_lea.vmem %s40_s6, 256  ;;  %p1508_p6 = scmp.lt.s32.totalorder %s40_s6, %s40_s6 }
  0x2c   :  { %p1504_p5 = scmp.ne.s32.totalorder %s40_s6, %s1503_s24  ;;  %p1509_p7 = scmp.lt.s32.totalorder %s1503_s24, %s1503_s24 }
  0x2e   :  { %p1510_p8 = por %p1509_p7, %p1508_p6 }
  0x30   :  { %p1511_p9 = pnand %p1510_p8, %p1504_p5 }
  0x32   :  { %1514 = shalt.err (!%p1511_p9)
}
  0x33   :  { %45 = dma.hbm_to_vmem [thread:$0]  %s1756_s2, 256, %s40_s6, [#allocation6], %s1544_s25, %s1544_s25, %s1545_s26  }
  0x34   :  { %1537 = dma.done.wait [#allocation3], 16  }
  0x35   :  { %1538 = vsyncadd [#allocation3], 4294967280 }
  0x36   :  { %1539 = dma.done.wait [#allocation6], 512  }
  0x37   :  { %1540 = vsyncadd [#allocation6], 4294966784  ;;  %v58_v0 = vlaneseq  ;;  %v1548_v1 = vmov 0.0|0.0   ;;  %vm1549_vm0 = vmmov 0   ;;  %v1550_v2 = vmov 0.0   ;;  %v278_v5 = vld [vmem:[#allocation5] sm:$0xff] }
  0x38   :  { %1368 = vmatprep.subr.bf16.mxu0 %v1548_v1  ;;  %1386 = vmatprep.subr.bf16.mxu1 %v1548_v1  ;;  %v279_v6 = vld [vmem:[#allocation5 + $0x8] sm:$0xff]  ;;  %v743_v7 = vld [vmem:[#allocation7] sm:$0xff]  ;;  %v285_v8 = vand.u32 4294901760, %v278_v5  ;;  %v744_v10 = vld [vmem:[#allocation7 + $0x8] sm:$0xff]  ;;  %s1551_s26 = smov 127   ;;  %s1552_s28 = smov 1  }
  0x39   :  { %1288 = vmatprep.mubr.msk.f32.mxu0 %vm1549_vm0, %v1550_v2  ;;  %1330 = vmatprep.mubr.msk.f32.mxu1 %vm1549_vm0, %v1550_v2  ;;  %v59_v3 = vshrl.u32 %v58_v0, 7  ;;  %v288_v9 = vand.u32 4294901760, %v279_v6  ;;  %v749_v11 = vand.u32 4294901760, %v743_v7  ;;  %v1239_v12 = vld [vmem:[#allocation2] ss:$0 sm:$0xff]  ;;  %v752_v13 = vand.u32 4294901760, %v744_v10 }
  0x3a   :  { %v1638_v16 = vsub.f32 %v278_v5, %v285_v8  ;;  %v1673_v41 = vld [vmem:[%s1757_s3] sm:$0xff]  ;;  %v1553_v51 = vmov 683565275   ;;  %v1554_v53 = vmov 2475754826   ;;  %s1559_s3 = smov [#allocation8]  }
  0x3b   :  { %v62_v4 = vcvt.s32.f32 %v59_v3  ;;  %v1636_v15 = vpack.c.bf16 %v288_v9, %v285_v8  ;;  %v1640_v17 = vsub.f32 %v279_v6, %v288_v9  ;;  %v1642_v18 = vsub.f32 %v743_v7, %v749_v11  ;;  %1208 = vrot.lane.b32.xlu0 %v1673_v41, %s1551_s26  ;;  %s1229_s29 = sshll.u32 %s1559_s3, 4  ;;  %s1230_s29 = int_to_ptr.vmem [resolvable:$true] %s1229_s29 }
  0x3c   :  { %v1644_v19 = vpack.c.bf16 %v752_v13, %v749_v11  ;;  %v1646_v20 = vsub.f32 %v744_v10, %v752_v13  ;;  %v364_v22 = vand.u32 4294901760, %v1638_v16  ;;  %v1555_v55 = vmov 2131351028   ;;  %s1515_s30 = scalar_lea.vmem %s1230_s29, 128  ;;  %p1520_p11 = scmp.lt.s32.totalorder %s1230_s29, %s1230_s29 }
  0x3d   :  { %v1634_v14 = vmul.f32 %v1239_v12, %v62_v4  ;;  %1370 = vmatpush3.bf16.msra.mxu0 %v1636_v15  ;;  %v371_v23 = vand.u32 4294901760, %v1640_v17  ;;  %v828_v24 = vand.u32 4294901760, %v1642_v18  ;;  %v1375_v29 = vpack.c.bf16 %v1640_v17, %v1638_v16  ;;  %p1516_p10 = scmp.ne.s32.totalorder %s1230_s29, %s1515_s30  ;;  %p1521_p12 = scmp.lt.s32.totalorder %s1515_s30, %s1515_s30 }
  0x3e   :  { %1388 = vmatpush3.bf16.msra.mxu1 %v1644_v19  ;;  %1371 = vmatprep.subr.bf16.mxu0 %v1548_v1  ;;  %v835_v25 = vand.u32 4294901760, %v1646_v20  ;;  %v365_v27 = vsub.f32 %v1638_v16, %v364_v22  ;;  %v1393_v33 = vpack.c.bf16 %v1646_v20, %v1642_v18  ;;  %v1556_v57 = vmov 2102212464  }
  0x3f   :  { %v74_v21 = vand.u32 2139095040, %v1634_v14  ;;  %1389 = vmatprep.subr.bf16.mxu1 %v1548_v1  ;;  %v372_v28 = vsub.f32 %v1640_v17, %v371_v23  ;;  %v71_v30 = vand.u32 2147483647, %v1634_v14  ;;  %v829_v31 = vsub.f32 %v1642_v18, %v828_v24  ;;  %1210 = vrot.lane.b32.xlu0 %v1673_v41, %s1552_s28  ;;  %p1522_p13 = por %p1521_p12, %p1520_p11 }
  0x40   :  { %v836_v32 = vsub.f32 %v1646_v20, %v835_v25  ;;  %v366_v35 = vand.u32 4294901760, %v365_v27  ;;  %v1666_v37 = vpack.c.bf16 %v371_v23, %v364_v22  ;;  %v1668_v40 = vpack.c.bf16 %v835_v25, %v828_v24 }
  0x41   :  { %v75_v26 = vshrl.u32 %v74_v21, 23  ;;  %v373_v36 = vand.u32 4294901760, %v372_v28  ;;  %v830_v38 = vand.u32 4294901760, %v829_v31  ;;  %v78_v44 = vand.u32 8388607, %v71_v30  ;;  %p1523_p0 = pnand %p1522_p13, %p1516_p10 }
  0x42   :  { %v837_v39 = vand.u32 4294901760, %v836_v32  ;;  %v1557_v59 = vmov 920167782   ;;  %v1558_v5 = vmov 1326507024   ;;  %vm73_vm8 = vcmp.lt.s32.totalorder %v1634_v14, 0 }
  0x43   :  { %v1240_v34 = vadd.s32 4294967169, %v75_v26  ;;  %v1675_v43 = vpack.c.bf16 %v373_v36, %v366_v35  ;;  %v79_v48 = vor.u32 8388608, %v78_v44  ;;  %vm72_vm9 = vcmp.le.f32.partialorder %v71_v30, 0.7853982 }
  0x44   :  { %v1680_v45 = vpack.c.bf16 %v837_v39, %v830_v38  ;;  %v1213_v16 = vand.u32 127, %v58_v0 }
  0x45   :  { %v81_v42 = vadd.s32 1, %v1240_v34  ;;  %v119_v7 = vshll.u32 %v79_v48, 8 }
  0x46   :  { %v1214_v18 = vand.u32 1, %v1213_v16 }
  0x47   :  { %vm82_vm1 = vcmp.gt.s32.totalorder %v81_v42, 0 }
  0x48   :  { %v83_v46 = vsel %vm82_vm1, %v81_v42, 0  ;;  %vm163_vm1 = vweird.f32 %v1634_v14 }
  0x49   :  { %v85_v47 = vand.u32 31, %v83_v46  ;;  %v84_v49 = vshrl.u32 %v83_v46, 5 }
  0x4b   :  { %v86_v50 = vsub.s32 32, %v85_v47  ;;  %v88_v52 = vshll.u32 %v1553_v51, %v85_v47  ;;  %v91_v54 = vshll.u32 %v1554_v53, %v85_v47  ;;  %v94_v56 = vshll.u32 %v1555_v55, %v85_v47 }
  0x4c   :  { %v97_v58 = vshll.u32 %v1556_v57, %v85_v47  ;;  %v100_v60 = vshll.u32 %v1557_v59, %v85_v47  ;;  %vm103_vm2 = vcmp.lt.s32.totalorder %v84_v49, 1  ;;  %vm106_vm3 = vcmp.lt.s32.totalorder %v84_v49, 4 }
  0x4d   :  { %v87_v61 = vshrl.u32 %v1553_v51, %v86_v50  ;;  %v89_v62 = vshrl.u32 %v1554_v53, %v86_v50  ;;  %v92_v63 = vshrl.u32 %v1555_v55, %v86_v50  ;;  %v95_v3 = vshrl.u32 %v1556_v57, %v86_v50 }
  0x4e   :  { %v98_v4 = vshrl.u32 %v1557_v59, %v86_v50  ;;  %v101_v6 = vshrl.u32 %v1558_v5, %v86_v50  ;;  %vm104_vm4 = vcmp.lt.s32.totalorder %v84_v49, 2  ;;  %vm105_vm5 = vcmp.lt.s32.totalorder %v84_v49, 3 }
  0x4f   :  { %v90_v8 = vor.u32 %v89_v62, %v88_v52  ;;  %v93_v9 = vor.u32 %v92_v63, %v91_v54  ;;  %v96_v10 = vor.u32 %v95_v3, %v94_v56 }
  0x50   :  { %v99_v11 = vor.u32 %v98_v4, %v97_v58  ;;  %v102_v12 = vor.u32 %v101_v6, %v100_v60 }
  0x51   :  { %v107_v13 = vsel %vm103_vm2, %v87_v61, %v90_v8  ;;  %v108_v21 = vsel %vm106_vm3, %v96_v10, 2102212464  ;;  %v111_v22 = vsel %vm103_vm2, %v90_v8, %v93_v9  ;;  %v115_v23 = vsel %vm103_vm2, %v93_v9, %v96_v10 }
  0x52   :  { %v109_v24 = vsel %vm105_vm5, %v93_v9, %v108_v21  ;;  %v112_v25 = vsel %vm106_vm3, %v99_v11, 920167782  ;;  %v116_v26 = vsel %vm106_vm3, %v102_v12, 1326507024  ;;  %vm280_vm2 = vcmask 130048  }
  0x53   :  { %v113_v27 = vsel %vm105_vm5, %v96_v10, %v112_v25  ;;  %v117_v28 = vsel %vm105_vm5, %v99_v11, %v116_v26  ;;  %v110_v31 = vsel %vm104_vm4, %v107_v13, %v109_v24  ;;  %vm1215_vm3 = vcmp.eq.s32.totalorder %v1214_v18, 0 }
  0x54   :  { %v114_v32 = vsel %vm104_vm4, %v111_v22, %v113_v27  ;;  %v118_v34 = vsel %vm104_vm4, %v115_v23, %v117_v28  ;;  %v126_v42 = vmul.u32 %v119_v7, %v110_v31 }
  0x55   :  { %v1683_v35 = vmul.u32.u64.low %v119_v7, %v118_v34  ;;  %v1684_v36 = vmul.u32.u64.high %v119_v7, %v118_v34, %v1683_v35  ;;  %v1686_v38 = vmul.u32.u64.low %v119_v7, %v114_v32  ;;  %v1687_v39 = vmul.u32.u64.high %v119_v7, %v114_v32, %v1686_v38 }
  0x57   :  { %vm128_vm6 = vc.u32 %v1684_v36, %v1686_v38  ;;  %v129_v44 = vadd.s32 1, %v1687_v39  ;;  %v127_v56 = vadd.s32 %v1686_v38, %v1684_v36 }
  0x59   :  { %v130_v46 = vsel %vm128_vm6, %v129_v44, %v1687_v39 }
  0x5a   :  { %v131_v47 = vadd.s32 %v130_v46, %v126_v42 }
  0x5c   :  { %v132_v48 = vadd.s32 536870912, %v131_v47 }
  0x5e   :  { %v133_v49 = vshrl.u32 %v132_v48, 30 }
  0x60   :  { %v134_v50 = vshll.u32 %v133_v49, 30  ;;  %v157_v7 = vsub.s32 4, %v133_v49 }
  0x62   :  { %v135_v51 = vsub.s32 %v131_v47, %v134_v50  ;;  %v158_v10 = vsel %vm73_vm8, %v157_v7, %v133_v49 }
  0x63   :  { %v160_v13 = vsel %vm72_vm9, 0, %v158_v10 }
  0x64   :  { %v137_v52 = vsub.s32 0, %v135_v51  ;;  %v164_v21 = vadd.s32 3, %v160_v13  ;;  %v268_v23 = vand.u32 3, %v160_v13 }
  0x66   :  { %v1241_v53 = vmin.u32 %v137_v52, %v135_v51  ;;  %v165_v22 = vand.u32 3, %v164_v21  ;;  %vm273_vm11 = vcmp.eq.s32.totalorder %v268_v23, 2  ;;  %vm270_vm13 = vcmp.eq.s32.totalorder %v268_v23, 0 }
  0x67   :  { %vm269_vm15 = vcmp.lt.s32.totalorder %v268_v23, 2 }
  0x68   :  { %v139_v54 = vclz %v1241_v53  ;;  %vm170_vm10 = vcmp.eq.s32.totalorder %v165_v22, 2  ;;  %vm167_vm12 = vcmp.eq.s32.totalorder %v165_v22, 0  ;;  %vm166_vm14 = vcmp.lt.s32.totalorder %v165_v22, 2 }
  0x6a   :  { %v1242_v55 = vadd.s32 4294967294, %v139_v54 }
  0x6c   :  { %vm1243_vm7 = vcmp.lt.s32.totalorder %v1242_v55, 0 }
  0x6d   :  { %v142_v57 = vsel %vm1243_vm7, 0, %v1242_v55 }
  0x6e   :  { %v143_v58 = vsub.s32 32, %v142_v57  ;;  %v144_v59 = vshll.u32 %v135_v51, %v142_v57  ;;  %v147_v60 = vsub.s32 4294967266, %v142_v57 }
  0x70   :  { %v145_v61 = vshrl.u32 %v127_v56, %v143_v58  ;;  %v148_v62 = vadd.s32 127, %v147_v60 }
  0x72   :  { %v146_v63 = vor.u32 %v145_v61, %v144_v59  ;;  %v149_v3 = vshll.u32 %v148_v62, 23 }
  0x74   :  { %v150_v4 = vor.u32 4788187, %v149_v3  ;;  %v153_v5 = vcvt.s32.f32 %v146_v63 }
  0x76   :  { %v151_v6 = vand.u32 2147483647, %v150_v4 }
  0x78   :  { %v154_v8 = vmul.f32 %v153_v5, %v151_v6 }
  0x7a   :  { %v155_v9 = vxor.u32 2147483648, %v154_v8 }
  0x7c   :  { %v156_v11 = vsel %vm73_vm8, %v155_v9, %v154_v8 }
  0x7d   :  { %v159_v12 = vsel %vm72_vm9, %v1634_v14, %v156_v11 }
  0x7e   :  { %1445 = vcosq.f32 %v159_v12 }
  0x7f   :  { %1447 = vsinq.f32 %v159_v12 }
  0x88   :  { %v1446_v24 = vpop.eup %1445 }
  0x89   :  { %v1448_v25 = vpop.eup %1447  ;;  %v171_v26 = vxor.u32 2147483648, %v1446_v24 }
  0x8a   :  { %v168_v30 = vxor.u32 2147483648, %v1448_v25 }
  0x8b   :  { %v172_v27 = vsel %vm170_vm10, %v171_v26, %v1448_v25  ;;  %v275_v28 = vsel %vm273_vm11, %v171_v26, %v1448_v25 }
  0x8c   :  { %v169_v31 = vsel %vm167_vm12, %v1446_v24, %v168_v30  ;;  %v272_v32 = vsel %vm270_vm13, %v1446_v24, %v168_v30 }
  0x8d   :  { %v173_v34 = vsel %vm166_vm14, %v169_v31, %v172_v27  ;;  %v276_v35 = vsel %vm269_vm15, %v272_v32, %v275_v28 }
  0x8e   :  { %v174_v36 = vsel %vm163_vm1, nan, %v173_v34  ;;  %v277_v38 = vsel %vm163_vm1, nan, %v276_v35 }
  0x8f   :  { %v282_v39 = vsel %vm280_vm2, %v174_v36, 0  ;;  %v746_v42 = vsel %vm280_vm2, %v277_v38, 0 }
  0x90   :  { %v351_v44 = vand.u32 4294901760, %v282_v39  ;;  %v815_v46 = vand.u32 4294901760, %v746_v42 }
  0x92   :  { %v352_v47 = vsub.f32 %v282_v39, %v351_v44  ;;  %v816_v48 = vsub.f32 %v746_v42, %v815_v46 }
  0x94   :  { %v353_v49 = vand.u32 4294901760, %v352_v47  ;;  %v817_v50 = vand.u32 4294901760, %v816_v48 }
  0x96   :  { %v354_v51 = vsub.f32 %v352_v47, %v353_v49  ;;  %v818_v52 = vsub.f32 %v816_v48, %v817_v50 }
  0x98   :  { %v355_v14 = vand.u32 4294901760, %v354_v51  ;;  %v819_v53 = vand.u32 4294901760, %v818_v52 }
  0x9a   :  { %1289 = vmatmul.mubr.f32.vlgmr.msra.gmra.mrb[0].mxu0 %v355_v14  ;;  %1331 = vmatmul.mubr.f32.vlgmr.msra.gmra.mrb[0].mxu1 %v819_v53 }
  0x9b   :  { %1373 = vmatpush3.bf16.msra.mxu0 %v1675_v43  ;;  %1391 = vmatpush3.bf16.msra.mxu1 %v1680_v45 }
  0x9c   :  { %1295 = vmatprep.mubr.msk.f32.mxu0 %vm1549_vm0, %v1550_v2  ;;  %1374 = vmatprep.subr.bf16.mxu0 %v1548_v1 }
  0x9d   :  { %1337 = vmatprep.mubr.msk.f32.mxu1 %vm1549_vm0, %v1550_v2  ;;  %1392 = vmatprep.subr.bf16.mxu1 %v1548_v1 }
  0xa2   :  { %1296 = vmatmul.mubr.f32.vlgmr.msra.gmra.mrb[0].mxu0 %v351_v44  ;;  %1338 = vmatmul.mubr.f32.vlgmr.msra.gmra.mrb[0].mxu1 %v815_v46 }
  0xa3   :  { %1376 = vmatpush3.bf16.msra.mxu0 %v1375_v29  ;;  %1394 = vmatpush3.bf16.msra.mxu1 %v1393_v33 }
  0xa4   :  { %1302 = vmatprep.mubr.msk.f32.mxu0 %vm1549_vm0, %v1550_v2  ;;  %1377 = vmatprep.subr.bf16.mxu0 %v1548_v1 }
  0xa5   :  { %1344 = vmatprep.mubr.msk.f32.mxu1 %vm1549_vm0, %v1550_v2  ;;  %1395 = vmatprep.subr.bf16.mxu1 %v1548_v1 }
  0xaa   :  { %1303 = vmatmul.mubr.f32.vlgmr.msra.gmra.mrb[0].mxu0 %v352_v47  ;;  %1345 = vmatmul.mubr.f32.vlgmr.msra.gmra.mrb[0].mxu1 %v816_v48 }
  0xab   :  { %1379 = vmatpush3.bf16.msra.mxu0 %v1636_v15  ;;  %1397 = vmatpush3.bf16.msra.mxu1 %v1644_v19 }
  0xac   :  { %1309 = vmatprep.mubr.msk.f32.mxu0 %vm1549_vm0, %v1550_v2  ;;  %1380 = vmatprep.subr.bf16.mxu0 %v1548_v1 }
  0xad   :  { %1351 = vmatprep.mubr.msk.f32.mxu1 %vm1549_vm0, %v1550_v2  ;;  %1398 = vmatprep.subr.bf16.mxu1 %v1548_v1  ;;  %v1209_v17 = vpop.permute.xlu0 %1208 }
  0xb1   :  { %v1211_v20 = vpop.permute.xlu0 %1210 }
  0xb2   :  { %1310 = vmatmul.mubr.f32.vlgmr.msra.gmra.mrb[0].mxu0 %v353_v49  ;;  %1352 = vmatmul.mubr.f32.vlgmr.msra.gmra.mrb[0].mxu1 %v817_v50  ;;  %v1218_v29 = vsel %vm1215_vm3, %v1209_v17, %v1211_v20 }
  0xb3   :  { %1382 = vmatpush3.bf16.msra.mxu0 %v1666_v37  ;;  %1400 = vmatpush3.bf16.msra.mxu1 %v1668_v40 }
  0xb4   :  { %1316 = vmatprep.mubr.msk.f32.mxu0 %vm1549_vm0, %v1550_v2  ;;  %1383 = vmatprep.subr.bf16.mxu0 %v1548_v1 }
  0xb5   :  { %1358 = vmatprep.mubr.msk.f32.mxu1 %vm1549_vm0, %v1550_v2  ;;  %1401 = vmatprep.subr.bf16.mxu1 %v1548_v1 }
  0xba   :  { %1317 = vmatmul.mubr.f32.vlgmr.msra.gmra.mrb[0].mxu0 %v351_v44  ;;  %1359 = vmatmul.mubr.f32.vlgmr.msra.gmra.mrb[0].mxu1 %v815_v46 }
  0xbb   :  { %1385 = vmatpush3.bf16.msra.mxu0 %v1636_v15  ;;  %1403 = vmatpush3.bf16.msra.mxu1 %v1644_v19 }
  0xbc   :  { %1323 = vmatprep.mubr.msk.f32.mxu0 %vm1549_vm0, %v1550_v2  ;;  %1365 = vmatprep.mubr.msk.f32.mxu1 %vm1549_vm0, %v1550_v2 }
  0xc2   :  { %1324 = vmatmul.mubr.f32.vlgmr.msra.gmra.mrb[0].mxu0 %v351_v44  ;;  %1366 = vmatmul.mubr.f32.vlgmr.msra.gmra.mrb[0].mxu1 %v815_v46 }
 0x195   :  { %v739_v1 = vpop.f32.mrb[0].mxu0  ;;  %v1203_v33 = vpop.f32.mrb[0].mxu1 }
 0x196   :  { %v1220_v15 = vmul.f32 %v1218_v29, %v739_v1  ;;  %v1219_v19 = vmul.f32 %v1673_v41, %v1203_v33  ;;  %v1325_v37 = vpop.f32.mrb[1].mxu0  ;;  %v1367_v40 = vpop.f32.mrb[1].mxu1 }
 0x198   :  { %v1221_v43 = vadd.f32 %v1220_v15, %v1219_v19 }
 0x19a   :  { %1222 = vst [vmem:[#allocation8] sm:$0xff] %v1221_v43 }
 0x19b   :  { %1526 = shalt.err (!%p1523_p0)
}
 0x19c   :  { %s1527_s7 = scalar_lea.hbm %s1758_s4, 128 }
 0x19d   :  { %p1528_p1 = scmp.ne.s32.totalorder %s1758_s4, %s1527_s7  ;;  %p1531_p2 = scmp.lt.u32.totalorder %s1527_s7, %s1758_s4 }
 0x19f   :  { %p1533_p3 = pnand %p1531_p2, %p1528_p1 }
 0x1a1   :  { %1536 = shalt.err (!%p1533_p3)
}
 0x1a2   :  { %1232 = dma.vmem_to_hbm [thread:$0]  %s1230_s29, 128, %s1758_s4, [#allocation4]  }
 0x1a3   :  { %1541 = dma.done.wait [#allocation4], 128  }
 0x1a4   :  { %1542 = vsyncadd [#allocation4], 4294967168 }
 0x1a5   :  { %1236 = vsyncpa [#allocation3], 1 }
 0x1a6   :  { %1237 = vsyncpa [#allocation6], 1 }
 0x1a7   :  { %1238 = vsyncpa [#allocation4], 1 }

</bundles_post_ra>
